<compile_context>
chip_gen: v7x
topology: tpu7x:2x2x1
jax: 0.10.0
libtpu: 0.0.40
codegen_flags: <defaults>
</compile_context>

<pallas_src>
import jax
import jax.numpy as jnp
import numpy as np
from jax.experimental import pallas as pl
from jax.experimental.pallas import tpu as pltpu

# ----- small, forward-consistent hyperparameters --------------------------
NB_OF_FILTERS = 4        # F
NB_OF_HIDDEN = 32        # hidden nodes
OUT_DIM = 3
NB_OF_EDGES = 8          # E
NB_OF_POINTS = 4         # P
BATCH = 8
EPS = 1e-5

E, P, F, H, O = NB_OF_EDGES, NB_OF_POINTS, NB_OF_FILTERS, NB_OF_HIDDEN, OUT_DIM
TW = 2 * (E - 1)              # pooled width per filter = 14
FW = F * TW                   # conv feature width      = 56
FEAT_DIM = FW + 2 * P         # fc input width          = 64
LANES = 128                   # padded lane width inside the kernel
XW = 2 * (E + 1 + P)          # flattened input width   = 26


def alt_conv_net_kernel(x_ref, ab_ref, w_ref, v_ref, out_ref):
    B = x_ref.shape[0]
    inv_b = 1.0 / B
    x = x_ref[...]                                          # (B, 128) lane-dense

    # --- Conv2d(1,F,(2,1)) + MaxPool2d((2,1),stride=1) + ReLU on the MXU ----
    # xa[:, f*TW+2r+c] = w0[f]*x[2r+c]   + w1[f]*x[2(r+1)+c]   (conv row r)
    # xb[:, f*TW+2r+c] = w0[f]*x[2(r+1)+c] + w1[f]*x[2(r+2)+c] (conv row r+1)
    # inner-point lanes FW..FEAT_DIM-1 pass through identity columns of A, B.
    xa = jnp.dot(x, ab_ref[0], preferred_element_type=jnp.float32)   # (B,128)
    xb = jnp.dot(x, ab_ref[1], preferred_element_type=jnp.float32)   # (B,128)
    pre = jnp.maximum(xa, xb) + v_ref[8:9, :]               # conv bias (conv lanes only)
    # ReLU on conv lanes (mask=0), identity on inner lanes (mask=1), padding stays 0.
    h = jnp.maximum(pre, pre * v_ref[9:10, :])              # (B,128), torch .view order

    def bn(hh, g, be):
        # single-pass training-mode BatchNorm1d (biased variance, clamped at 0);
        # gamma folded into the rsqrt scale.  Zero-padded lanes stay exactly 0;
        # lane 127 (gamma=0, beta=1) becomes exactly 1.0 -> constant bias lane.
        s1 = jnp.sum(hh, axis=0, keepdims=True)
        s2 = jnp.sum(hh * hh, axis=0, keepdims=True)
        mean = s1 * inv_b
        var = jnp.maximum(s2 * inv_b - mean * mean, 0.0)
        scale = jax.lax.rsqrt(var + EPS) * g
        return hh * scale + (be - mean * scale)

    def fc(hh, li):
        g = v_ref[2 * li:2 * li + 1, :]
        be = v_ref[2 * li + 1:2 * li + 2, :]
        # layer bias lives in row 127 of w_ref[li]; bn() emits 1.0 at lane 127,
        # so the matmul already includes "+ bias" -- no extra VPU add.
        return jnp.dot(bn(hh, g, be), w_ref[li],
                       preferred_element_type=jnp.float32)   # (B, 32)

    pad = jnp.zeros((B, LANES - H), jnp.float32)            # hoisted, reused 3x
    h = jnp.concatenate([jnp.tanh(fc(h, 0)), pad], axis=1)
    h = jnp.concatenate([jnp.tanh(fc(h, 1)), pad], axis=1)
    h = jnp.concatenate([jnp.tanh(fc(h, 2)), pad], axis=1)
    out_ref[...] = fc(h, 3)                                 # (B, 32); cols >= O are 0


def alt_2d_conv_net_forward(x, packed):
    """x: (B, 1, E+1+P, 2) float32 in NCHW. Returns (B, OUT_DIM)."""
    B = x.shape[0]
    x_pad = jnp.pad(x.reshape(B, XW), ((0, 0), (0, LANES - XW)))  # (B, 128)
    vmem = pl.BlockSpec(memory_space=pltpu.MemorySpace.VMEM)
    out = pl.pallas_call(
        alt_conv_net_kernel,
        out_shape=jax.ShapeDtypeStruct((B, H), jnp.float32),
        in_specs=[vmem, vmem, vmem, vmem],
        out_specs=vmem,
        cost_estimate=pl.CostEstimate(
            flops=2 * B * LANES * LANES * 2 + 4 * 2 * B * LANES * H,
            transcendentals=4 * LANES + 3 * B * H,
            bytes_accessed=4 * (B * LANES + 2 * LANES * LANES
                                + 4 * LANES * H + 16 * LANES + B * H)),
    )(x_pad, packed["AB"], packed["W"], packed["V"])
    return out[:, :OUT_DIM]


def make_params(key):
    ks = jax.random.split(key, 11)
    D = FEAT_DIM
    p = {
        # Conv2d(1, F, kernel=(2,1)): weight (F,1,2,1) -> two scalar taps / filter
        "conv_w0": jax.random.normal(ks[0], (F,), jnp.float32) * 0.3,
        "conv_w1": jax.random.normal(ks[1], (F,), jnp.float32) * 0.3,
        "conv_b": jax.random.normal(ks[2], (F,), jnp.float32) * 0.1,
        # BatchNorm1d affine params (PyTorch init: gamma=1, beta=0)
        "g1": jnp.ones((1, D), jnp.float32), "be1": jnp.zeros((1, D), jnp.float32),
        "g2": jnp.ones((1, H), jnp.float32), "be2": jnp.zeros((1, H), jnp.float32),
        "g3": jnp.ones((1, H), jnp.float32), "be3": jnp.zeros((1, H), jnp.float32),
        "g4": jnp.ones((1, H), jnp.float32), "be4": jnp.zeros((1, H), jnp.float32),
        # Linear weights stored as (in, out) so y = x @ W + b
        "w1": jax.random.normal(ks[3], (D, H), jnp.float32) * 0.1,
        "b1": jax.random.normal(ks[4], (1, H), jnp.float32) * 0.05,
        "w2": jax.random.normal(ks[5], (H, H), jnp.float32) * 0.1,
        "b2": jax.random.normal(ks[6], (1, H), jnp.float32) * 0.05,
        "w3": jax.random.normal(ks[7], (H, H), jnp.float32) * 0.1,
        "b3": jax.random.normal(ks[8], (1, H), jnp.float32) * 0.05,
        "w4": jax.random.normal(ks[9], (H, O), jnp.float32) * 0.1,
        "b4": jax.random.normal(ks[10], (1, O), jnp.float32) * 0.05,
    }
    return p


def pack_params(p):
    """Pack all parameters into three small slabs (done once, on host)."""
    # --- A / B selection+tap matrices for the conv front end ---------------
    A = np.zeros((LANES, LANES), np.float32)
    Bm = np.zeros((LANES, LANES), np.float32)
    w0 = np.asarray(p["conv_w0"]); w1 = np.asarray(p["conv_w1"])
    for f in range(F):
        for r in range(E - 1):          # pooled rows
            for c in range(2):
                col = f * TW + 2 * r + c
                A[2 * r + c, col] = w0[f]
                A[2 * (r + 1) + c, col] = w1[f]
                Bm[2 * (r + 1) + c, col] = w0[f]
                Bm[2 * (r + 2) + c, col] = w1[f]
    for k in range(2 * P):              # inner-point passthrough (identity)
        A[2 * (E + 1) + k, FW + k] = 1.0
        Bm[2 * (E + 1) + k, FW + k] = 1.0

    # --- fc weight slab (4, 128, 32); bias in row 127 (constant-1 lane) ----
    W = np.zeros((4, LANES, H), np.float32)
    W[0, :FEAT_DIM, :H] = np.asarray(p["w1"]);  W[0, 127, :H] = np.asarray(p["b1"]).reshape(-1)
    W[1, :H, :H] = np.asarray(p["w2"]);          W[1, 127, :H] = np.asarray(p["b2"]).reshape(-1)
    W[2, :H, :H] = np.asarray(p["w3"]);          W[2, 127, :H] = np.asarray(p["b3"]).reshape(-1)
    W[3, :H, :O] = np.asarray(p["w4"]);          W[3, 127, :O] = np.asarray(p["b4"]).reshape(-1)

    # --- row-vector slab: BN gamma/beta pairs, conv bias row, relu mask ----
    V = np.zeros((16, LANES), np.float32)
    rows = [("g1", FEAT_DIM), ("be1", FEAT_DIM),
            ("g2", H), ("be2", H), ("g3", H), ("be3", H), ("g4", H), ("be4", H)]
    for i, (name, width) in enumerate(rows):
        V[i, :width] = np.asarray(p[name]).reshape(-1)
    V[1, 127] = 1.0; V[3, 127] = 1.0; V[5, 127] = 1.0; V[7, 127] = 1.0  # beta=1 at bias lane
    V[8, :FW] = np.repeat(np.asarray(p["conv_b"]), TW)   # conv bias, filter-major lanes
    V[9, FW:FEAT_DIM] = 1.0                              # passthrough mask (inner points)

    # correctness guards (review concern): padded gamma lanes must be exactly 0
    for gi, width in ((0, FEAT_DIM), (2, H), (4, H), (6, H)):
        assert not np.any(V[gi, width:]), "gamma padding must stay zero"
    assert not np.any(A[:, FEAT_DIM:]) and not np.any(Bm[:, FEAT_DIM:])

    return {"AB": jnp.asarray(np.stack([A, Bm])),
            "W": jnp.asarray(W),
            "V": jnp.asarray(V)}


def reference_forward(x, p):
    """Pure-JAX reference mirroring the PyTorch forward (training-mode BN)."""
    B = x.shape[0]
    poly = x[:, 0, : E + 1, :]
    inner = x[:, 0, E + 1: E + 1 + P, :].reshape(B, 2 * P)
    conv = (poly[:, None, :E, :] * p["conv_w0"][None, :, None, None]
            + poly[:, None, 1:, :] * p["conv_w1"][None, :, None, None]
            + p["conv_b"][None, :, None, None])                     # (B,F,E,2)
    pooled = jnp.maximum(conv[:, :, : E - 1, :], conv[:, :, 1:, :])
    feat = jnp.maximum(pooled, 0.0).reshape(B, F * (E - 1) * 2)
    h = jnp.concatenate([feat, inner], axis=1)

    def bn(h, g, b):
        m = jnp.mean(h, axis=0, keepdims=True)
        v = jnp.mean((h - m) ** 2, axis=0, keepdims=True)
        return (h - m) * jax.lax.rsqrt(v + EPS) * g + b

    h = jnp.tanh(bn(h, p["g1"], p["be1"]) @ p["w1"] + p["b1"])
    h = jnp.tanh(bn(h, p["g2"], p["be2"]) @ p["w2"] + p["b2"])
    h = jnp.tanh(bn(h, p["g3"], p["be3"]) @ p["w3"] + p["b3"])
    return bn(h, p["g4"], p["be4"]) @ p["w4"] + p["b4"]


if __name__ == "__main__":
    key = jax.random.PRNGKey(0)
    k_x, k_p = jax.random.split(key)
    x = jax.random.normal(
        k_x, (BATCH, 1, NB_OF_EDGES + 1 + NB_OF_POINTS, 2), jnp.float32)
    params = make_params(k_p)
    packed = jax.tree_util.tree_map(jax.block_until_ready, pack_params(params))

    fwd = jax.jit(alt_2d_conv_net_forward)
    out = jax.block_until_ready(fwd(x, packed))
    ref = jax.block_until_ready(reference_forward(x, params))

    assert out.shape == (BATCH, OUT_DIM)
    # small headroom over 1e-3 for MXU f32 rounding in the conv-via-matmul path
    assert jnp.allclose(out, ref, rtol=2e-3, atol=2e-3), (out, ref)
    print("KERNEL_OK")
</pallas_src>

<mosaic_0001>
module attributes {stable_mosaic.version = 11 : i64} {
  func.func @alt_conv_net_kernel(%arg0: memref<8x128xf32, #tpu.memory_space<vmem>>, %arg1: memref<2x128x128xf32, #tpu.memory_space<vmem>>, %arg2: memref<4x128x32xf32, #tpu.memory_space<vmem>>, %arg3: memref<16x128xf32, #tpu.memory_space<vmem>>, %arg4: memref<8x32xf32, #tpu.memory_space<vmem>>) attributes {dimension_semantics = [], scalar_prefetch = 0 : i64, scratch_operands = 0 : i64, tpu.core_type = #tpu.core_type<tc>} {
    %c0 = arith.constant 0 : index
    %c0_0 = arith.constant 0 : index
    %0 = vector.load %arg0[%c0, %c0_0] : memref<8x128xf32, #tpu.memory_space<vmem>>, vector<8x128xf32>
    %c0_1 = arith.constant 0 : index
    %c0_2 = arith.constant 0 : index
    %c0_3 = arith.constant 0 : index
    %1 = vector.load %arg1[%c0_1, %c0_2, %c0_3] : memref<2x128x128xf32, #tpu.memory_space<vmem>>, vector<1x128x128xf32>
    %2 = vector.shape_cast %1 : vector<1x128x128xf32> to vector<128x128xf32>
    %cst = arith.constant dense<0.000000e+00> : vector<8x128xf32>
    %3 = tpu.matmul %0, %2, %cst {dimension_numbers = #tpu.dot_dimension_numbers<[1], [0], [0], [1], [0, 0, 1, 1], [], []>} : vector<8x128xf32>, vector<128x128xf32>, vector<8x128xf32> -> vector<8x128xf32>
    %c1 = arith.constant 1 : index
    %c0_4 = arith.constant 0 : index
    %c0_5 = arith.constant 0 : index
    %4 = vector.load %arg1[%c1, %c0_4, %c0_5] : memref<2x128x128xf32, #tpu.memory_space<vmem>>, vector<1x128x128xf32>
    %5 = vector.shape_cast %4 : vector<1x128x128xf32> to vector<128x128xf32>
    %cst_6 = arith.constant dense<0.000000e+00> : vector<8x128xf32>
    %6 = tpu.matmul %0, %5, %cst_6 {dimension_numbers = #tpu.dot_dimension_numbers<[1], [0], [0], [1], [0, 0, 1, 1], [], []>} : vector<8x128xf32>, vector<128x128xf32>, vector<8x128xf32> -> vector<8x128xf32>
    %7 = arith.maximumf %3, %6 : vector<8x128xf32>
    %c8 = arith.constant 8 : index
    %c0_7 = arith.constant 0 : index
    %8 = vector.load %arg3[%c8, %c0_7] : memref<16x128xf32, #tpu.memory_space<vmem>>, vector<1x128xf32>
    %9 = vector.broadcast %8 : vector<1x128xf32> to vector<8x128xf32>
    %10 = arith.addf %7, %9 : vector<8x128xf32>
    %c9 = arith.constant 9 : index
    %c0_8 = arith.constant 0 : index
    %11 = vector.load %arg3[%c9, %c0_8] : memref<16x128xf32, #tpu.memory_space<vmem>>, vector<1x128xf32>
    %12 = vector.broadcast %11 : vector<1x128xf32> to vector<8x128xf32>
    %13 = arith.mulf %10, %12 : vector<8x128xf32>
    %14 = arith.maximumf %10, %13 : vector<8x128xf32>
    %cst_9 = arith.constant 0.000000e+00 : f32
    %15 = vector.broadcast %cst_9 : f32 to vector<8x96xf32>
    %c0_10 = arith.constant 0 : index
    %c0_11 = arith.constant 0 : index
    %16 = vector.load %arg3[%c0_10, %c0_11] : memref<16x128xf32, #tpu.memory_space<vmem>>, vector<1x128xf32>
    %c1_12 = arith.constant 1 : index
    %c0_13 = arith.constant 0 : index
    %17 = vector.load %arg3[%c1_12, %c0_13] : memref<16x128xf32, #tpu.memory_space<vmem>>, vector<1x128xf32>
    %cst_14 = arith.constant dense<0.000000e+00> : vector<128xf32>
    %18 = vector.multi_reduction <add>, %14, %cst_14 [0] : vector<8x128xf32> to vector<128xf32>
    %19 = vector.shape_cast %18 : vector<128xf32> to vector<1x128xf32>
    %20 = arith.mulf %14, %14 : vector<8x128xf32>
    %cst_15 = arith.constant dense<0.000000e+00> : vector<128xf32>
    %21 = vector.multi_reduction <add>, %20, %cst_15 [0] : vector<8x128xf32> to vector<128xf32>
    %22 = vector.shape_cast %21 : vector<128xf32> to vector<1x128xf32>
    %cst_16 = arith.constant 1.250000e-01 : f32
    %23 = vector.broadcast %cst_16 : f32 to vector<1x128xf32>
    %24 = arith.mulf %19, %23 : vector<1x128xf32>
    %cst_17 = arith.constant 1.250000e-01 : f32
    %25 = vector.broadcast %cst_17 : f32 to vector<1x128xf32>
    %26 = arith.mulf %22, %25 : vector<1x128xf32>
    %27 = arith.mulf %24, %24 : vector<1x128xf32>
    %28 = arith.subf %26, %27 : vector<1x128xf32>
    %cst_18 = arith.constant 0.000000e+00 : f32
    %29 = vector.broadcast %cst_18 : f32 to vector<1x128xf32>
    %30 = arith.maximumf %28, %29 : vector<1x128xf32>
    %cst_19 = arith.constant 9.99999974E-6 : f32
    %31 = vector.broadcast %cst_19 : f32 to vector<1x128xf32>
    %32 = arith.addf %30, %31 : vector<1x128xf32>
    %33 = math.rsqrt %32 : vector<1x128xf32>
    %34 = arith.mulf %33, %16 : vector<1x128xf32>
    %35 = vector.broadcast %34 : vector<1x128xf32> to vector<8x128xf32>
    %36 = arith.mulf %14, %35 : vector<8x128xf32>
    %37 = arith.mulf %24, %34 : vector<1x128xf32>
    %38 = arith.subf %17, %37 : vector<1x128xf32>
    %39 = vector.broadcast %38 : vector<1x128xf32> to vector<8x128xf32>
    %40 = arith.addf %36, %39 : vector<8x128xf32>
    %c0_20 = arith.constant 0 : index
    %c0_21 = arith.constant 0 : index
    %c0_22 = arith.constant 0 : index
    %41 = vector.load %arg2[%c0_20, %c0_21, %c0_22] : memref<4x128x32xf32, #tpu.memory_space<vmem>>, vector<1x128x32xf32>
    %42 = vector.shape_cast %41 : vector<1x128x32xf32> to vector<128x32xf32>
    %cst_23 = arith.constant dense<0.000000e+00> : vector<8x32xf32>
    %43 = tpu.matmul %40, %42, %cst_23 {dimension_numbers = #tpu.dot_dimension_numbers<[1], [0], [0], [1], [0, 0, 1, 1], [], []>} : vector<8x128xf32>, vector<128x32xf32>, vector<8x32xf32> -> vector<8x32xf32>
    %44 = math.tanh %43 : vector<8x32xf32>
    %45 = tpu.concatenate %44, %15 in 1 : vector<8x32xf32>, vector<8x96xf32> -> vector<8x128xf32>
    %c2 = arith.constant 2 : index
    %c0_24 = arith.constant 0 : index
    %46 = vector.load %arg3[%c2, %c0_24] : memref<16x128xf32, #tpu.memory_space<vmem>>, vector<1x128xf32>
    %c3 = arith.constant 3 : index
    %c0_25 = arith.constant 0 : index
    %47 = vector.load %arg3[%c3, %c0_25] : memref<16x128xf32, #tpu.memory_space<vmem>>, vector<1x128xf32>
    %cst_26 = arith.constant dense<0.000000e+00> : vector<128xf32>
    %48 = vector.multi_reduction <add>, %45, %cst_26 [0] : vector<8x128xf32> to vector<128xf32>
    %49 = vector.shape_cast %48 : vector<128xf32> to vector<1x128xf32>
    %50 = arith.mulf %45, %45 : vector<8x128xf32>
    %cst_27 = arith.constant dense<0.000000e+00> : vector<128xf32>
    %51 = vector.multi_reduction <add>, %50, %cst_27 [0] : vector<8x128xf32> to vector<128xf32>
    %52 = vector.shape_cast %51 : vector<128xf32> to vector<1x128xf32>
    %cst_28 = arith.constant 1.250000e-01 : f32
    %53 = vector.broadcast %cst_28 : f32 to vector<1x128xf32>
    %54 = arith.mulf %49, %53 : vector<1x128xf32>
    %cst_29 = arith.constant 1.250000e-01 : f32
    %55 = vector.broadcast %cst_29 : f32 to vector<1x128xf32>
    %56 = arith.mulf %52, %55 : vector<1x128xf32>
    %57 = arith.mulf %54, %54 : vector<1x128xf32>
    %58 = arith.subf %56, %57 : vector<1x128xf32>
    %cst_30 = arith.constant 0.000000e+00 : f32
    %59 = vector.broadcast %cst_30 : f32 to vector<1x128xf32>
    %60 = arith.maximumf %58, %59 : vector<1x128xf32>
    %cst_31 = arith.constant 9.99999974E-6 : f32
    %61 = vector.broadcast %cst_31 : f32 to vector<1x128xf32>
    %62 = arith.addf %60, %61 : vector<1x128xf32>
    %63 = math.rsqrt %62 : vector<1x128xf32>
    %64 = arith.mulf %63, %46 : vector<1x128xf32>
    %65 = vector.broadcast %64 : vector<1x128xf32> to vector<8x128xf32>
    %66 = arith.mulf %45, %65 : vector<8x128xf32>
    %67 = arith.mulf %54, %64 : vector<1x128xf32>
    %68 = arith.subf %47, %67 : vector<1x128xf32>
    %69 = vector.broadcast %68 : vector<1x128xf32> to vector<8x128xf32>
    %70 = arith.addf %66, %69 : vector<8x128xf32>
    %c1_32 = arith.constant 1 : index
    %c0_33 = arith.constant 0 : index
    %c0_34 = arith.constant 0 : index
    %71 = vector.load %arg2[%c1_32, %c0_33, %c0_34] : memref<4x128x32xf32, #tpu.memory_space<vmem>>, vector<1x128x32xf32>
    %72 = vector.shape_cast %71 : vector<1x128x32xf32> to vector<128x32xf32>
    %cst_35 = arith.constant dense<0.000000e+00> : vector<8x32xf32>
    %73 = tpu.matmul %70, %72, %cst_35 {dimension_numbers = #tpu.dot_dimension_numbers<[1], [0], [0], [1], [0, 0, 1, 1], [], []>} : vector<8x128xf32>, vector<128x32xf32>, vector<8x32xf32> -> vector<8x32xf32>
    %74 = math.tanh %73 : vector<8x32xf32>
    %75 = tpu.concatenate %74, %15 in 1 : vector<8x32xf32>, vector<8x96xf32> -> vector<8x128xf32>
    %c4 = arith.constant 4 : index
    %c0_36 = arith.constant 0 : index
    %76 = vector.load %arg3[%c4, %c0_36] : memref<16x128xf32, #tpu.memory_space<vmem>>, vector<1x128xf32>
    %c5 = arith.constant 5 : index
    %c0_37 = arith.constant 0 : index
    %77 = vector.load %arg3[%c5, %c0_37] : memref<16x128xf32, #tpu.memory_space<vmem>>, vector<1x128xf32>
    %cst_38 = arith.constant dense<0.000000e+00> : vector<128xf32>
    %78 = vector.multi_reduction <add>, %75, %cst_38 [0] : vector<8x128xf32> to vector<128xf32>
    %79 = vector.shape_cast %78 : vector<128xf32> to vector<1x128xf32>
    %80 = arith.mulf %75, %75 : vector<8x128xf32>
    %cst_39 = arith.constant dense<0.000000e+00> : vector<128xf32>
    %81 = vector.multi_reduction <add>, %80, %cst_39 [0] : vector<8x128xf32> to vector<128xf32>
    %82 = vector.shape_cast %81 : vector<128xf32> to vector<1x128xf32>
    %cst_40 = arith.constant 1.250000e-01 : f32
    %83 = vector.broadcast %cst_40 : f32 to vector<1x128xf32>
    %84 = arith.mulf %79, %83 : vector<1x128xf32>
    %cst_41 = arith.constant 1.250000e-01 : f32
    %85 = vector.broadcast %cst_41 : f32 to vector<1x128xf32>
    %86 = arith.mulf %82, %85 : vector<1x128xf32>
    %87 = arith.mulf %84, %84 : vector<1x128xf32>
    %88 = arith.subf %86, %87 : vector<1x128xf32>
    %cst_42 = arith.constant 0.000000e+00 : f32
    %89 = vector.broadcast %cst_42 : f32 to vector<1x128xf32>
    %90 = arith.maximumf %88, %89 : vector<1x128xf32>
    %cst_43 = arith.constant 9.99999974E-6 : f32
    %91 = vector.broadcast %cst_43 : f32 to vector<1x128xf32>
    %92 = arith.addf %90, %91 : vector<1x128xf32>
    %93 = math.rsqrt %92 : vector<1x128xf32>
    %94 = arith.mulf %93, %76 : vector<1x128xf32>
    %95 = vector.broadcast %94 : vector<1x128xf32> to vector<8x128xf32>
    %96 = arith.mulf %75, %95 : vector<8x128xf32>
    %97 = arith.mulf %84, %94 : vector<1x128xf32>
    %98 = arith.subf %77, %97 : vector<1x128xf32>
    %99 = vector.broadcast %98 : vector<1x128xf32> to vector<8x128xf32>
    %100 = arith.addf %96, %99 : vector<8x128xf32>
    %c2_44 = arith.constant 2 : index
    %c0_45 = arith.constant 0 : index
    %c0_46 = arith.constant 0 : index
    %101 = vector.load %arg2[%c2_44, %c0_45, %c0_46] : memref<4x128x32xf32, #tpu.memory_space<vmem>>, vector<1x128x32xf32>
    %102 = vector.shape_cast %101 : vector<1x128x32xf32> to vector<128x32xf32>
    %cst_47 = arith.constant dense<0.000000e+00> : vector<8x32xf32>
    %103 = tpu.matmul %100, %102, %cst_47 {dimension_numbers = #tpu.dot_dimension_numbers<[1], [0], [0], [1], [0, 0, 1, 1], [], []>} : vector<8x128xf32>, vector<128x32xf32>, vector<8x32xf32> -> vector<8x32xf32>
    %104 = math.tanh %103 : vector<8x32xf32>
    %105 = tpu.concatenate %104, %15 in 1 : vector<8x32xf32>, vector<8x96xf32> -> vector<8x128xf32>
    %c6 = arith.constant 6 : index
    %c0_48 = arith.constant 0 : index
    %106 = vector.load %arg3[%c6, %c0_48] : memref<16x128xf32, #tpu.memory_space<vmem>>, vector<1x128xf32>
    %c7 = arith.constant 7 : index
    %c0_49 = arith.constant 0 : index
    %107 = vector.load %arg3[%c7, %c0_49] : memref<16x128xf32, #tpu.memory_space<vmem>>, vector<1x128xf32>
    %cst_50 = arith.constant dense<0.000000e+00> : vector<128xf32>
    %108 = vector.multi_reduction <add>, %105, %cst_50 [0] : vector<8x128xf32> to vector<128xf32>
    %109 = vector.shape_cast %108 : vector<128xf32> to vector<1x128xf32>
    %110 = arith.mulf %105, %105 : vector<8x128xf32>
    %cst_51 = arith.constant dense<0.000000e+00> : vector<128xf32>
    %111 = vector.multi_reduction <add>, %110, %cst_51 [0] : vector<8x128xf32> to vector<128xf32>
    %112 = vector.shape_cast %111 : vector<128xf32> to vector<1x128xf32>
    %cst_52 = arith.constant 1.250000e-01 : f32
    %113 = vector.broadcast %cst_52 : f32 to vector<1x128xf32>
    %114 = arith.mulf %109, %113 : vector<1x128xf32>
    %cst_53 = arith.constant 1.250000e-01 : f32
    %115 = vector.broadcast %cst_53 : f32 to vector<1x128xf32>
    %116 = arith.mulf %112, %115 : vector<1x128xf32>
    %117 = arith.mulf %114, %114 : vector<1x128xf32>
    %118 = arith.subf %116, %117 : vector<1x128xf32>
    %cst_54 = arith.constant 0.000000e+00 : f32
    %119 = vector.broadcast %cst_54 : f32 to vector<1x128xf32>
    %120 = arith.maximumf %118, %119 : vector<1x128xf32>
    %cst_55 = arith.constant 9.99999974E-6 : f32
    %121 = vector.broadcast %cst_55 : f32 to vector<1x128xf32>
    %122 = arith.addf %120, %121 : vector<1x128xf32>
    %123 = math.rsqrt %122 : vector<1x128xf32>
    %124 = arith.mulf %123, %106 : vector<1x128xf32>
    %125 = vector.broadcast %124 : vector<1x128xf32> to vector<8x128xf32>
    %126 = arith.mulf %105, %125 : vector<8x128xf32>
    %127 = arith.mulf %114, %124 : vector<1x128xf32>
    %128 = arith.subf %107, %127 : vector<1x128xf32>
    %129 = vector.broadcast %128 : vector<1x128xf32> to vector<8x128xf32>
    %130 = arith.addf %126, %129 : vector<8x128xf32>
    %c3_56 = arith.constant 3 : index
    %c0_57 = arith.constant 0 : index
    %c0_58 = arith.constant 0 : index
    %131 = vector.load %arg2[%c3_56, %c0_57, %c0_58] : memref<4x128x32xf32, #tpu.memory_space<vmem>>, vector<1x128x32xf32>
    %132 = vector.shape_cast %131 : vector<1x128x32xf32> to vector<128x32xf32>
    %cst_59 = arith.constant dense<0.000000e+00> : vector<8x32xf32>
    %133 = tpu.matmul %130, %132, %cst_59 {dimension_numbers = #tpu.dot_dimension_numbers<[1], [0], [0], [1], [0, 0, 1, 1], [], []>} : vector<8x128xf32>, vector<128x32xf32>, vector<8x32xf32> -> vector<8x32xf32>
    %c0_60 = arith.constant 0 : index
    %c0_61 = arith.constant 0 : index
    %134 = vector.load %arg4[%c0_60, %c0_61] : memref<8x32xf32, #tpu.memory_space<vmem>>, vector<8x32xf32>
    tpu.vector_store %arg4[%c0_60, %c0_61], %133 {strides = array<i32>} : memref<8x32xf32, #tpu.memory_space<vmem>>, vector<8x32xf32>,
    return
  }
}

</mosaic_0001>

<bundles_post_ra>
// kernel: alt_2d_conv_net_forward.1
= control target key start
LH: loop header
LB: loop body
LE: loop exit
PB: predicated region body
PF: predicated region fallthrough
CT: control target
= control target key end

     0   :  { %v1243_v0 = vmov 0.0|0.0   ;;  %vm1244_vm0 = vmmov 0   ;;  %v1245_v8 = vmov 0.0   ;;  %vm327_vm1 = vcmask 261120   ;;  %s1669_s1 = inlined_call_operand.vmem [shape: f32[2,128,128], index: 1, kind: input, shape index: {}]   ;;  %s1670_s0 = inlined_call_operand.vmem [shape: f32[8,128], index: 0, kind: input, shape index: {}]   ;;  %s1671_s2 = inlined_call_operand.vmem [shape: f32[4,128,32], index: 2, kind: input, shape index: {}]   ;;  %s1672_s3 = inlined_call_operand.vmem [shape: f32[16,128], index: 3, kind: input, shape index: {}]   ;;  %s1673_s4 = inlined_call_operand.vmem [shape: f32[8,32], index: 4, kind: output, shape index: {}]  }
   0x1   :  { %1082 = vmatprep.subr.bf16.mxu0 %v1243_v0  ;;  %1106 = vmatprep.subr.bf16.mxu1 %v1243_v0  ;;  %v18_v1 = vld [vmem:[%s1669_s1] sm:$0xff]  ;;  %v19_v2 = vld [vmem:[%s1669_s1 + $0x8] sm:$0xff]  ;;  %v20_v6 = vld [vmem:[%s1669_s1 + $0x10] sm:$0xff] }
   0x2   :  { %v704_v3 = vld [vmem:[%s1669_s1 + $0x80] sm:$0xff]  ;;  %v1083_v4 = vpack.c.bf16 %v19_v2, %v18_v1  ;;  %v705_v5 = vld [vmem:[%s1669_s1 + $0x88] sm:$0xff]  ;;  %v21_v7 = vld [vmem:[%s1669_s1 + $0x18] sm:$0xff]  ;;  %904 = vmatprep.mubr.msk.f32.mxu0 %vm1244_vm0, %v1245_v8  ;;  %939 = vmatprep.mubr.msk.f32.mxu1 %vm1244_vm0, %v1245_v8 }
   0x3   :  { %v1107_v9 = vpack.c.bf16 %v705_v5, %v704_v3  ;;  %v706_v10 = vld [vmem:[%s1669_s1 + $0x90] sm:$0xff]  ;;  %v707_v11 = vld [vmem:[%s1669_s1 + $0x98] sm:$0xff]  ;;  %v1086_v12 = vpack.c.bf16 %v21_v7, %v20_v6  ;;  %v22_v14 = vld [vmem:[%s1669_s1 + $0x20] sm:$0xff] }
   0x4   :  { %1084 = vmatpush3.bf16.msra.mxu0 %v1083_v4  ;;  %v1110_v13 = vpack.c.bf16 %v707_v11, %v706_v10  ;;  %v23_v15 = vld [vmem:[%s1669_s1 + $0x28] sm:$0xff]  ;;  %v708_v16 = vld [vmem:[%s1669_s1 + $0xa0] sm:$0xff]  ;;  %v24_v20 = vld [vmem:[%s1669_s1 + $0x30] sm:$0xff] }
   0x5   :  { %1108 = vmatpush3.bf16.msra.mxu1 %v1107_v9  ;;  %1085 = vmatprep.subr.bf16.mxu0 %v1243_v0  ;;  %v709_v17 = vld [vmem:[%s1669_s1 + $0xa8] sm:$0xff]  ;;  %v1089_v18 = vpack.c.bf16 %v23_v15, %v22_v14  ;;  %v25_v21 = vld [vmem:[%s1669_s1 + $0x38] sm:$0xff]  ;;  %v710_v22 = vld [vmem:[%s1669_s1 + $0xb0] sm:$0xff] }
   0x6   :  { %1109 = vmatprep.subr.bf16.mxu1 %v1243_v0  ;;  %v1113_v19 = vpack.c.bf16 %v709_v17, %v708_v16  ;;  %v711_v23 = vld [vmem:[%s1669_s1 + $0xb8] sm:$0xff]  ;;  %v1092_v24 = vpack.c.bf16 %v25_v21, %v24_v20  ;;  %v26_v26 = vld [vmem:[%s1669_s1 + $0x40] sm:$0xff]  ;;  %v27_v27 = vld [vmem:[%s1669_s1 + $0x48] sm:$0xff] }
   0x7   :  { %v1116_v25 = vpack.c.bf16 %v711_v23, %v710_v22  ;;  %v712_v28 = vld [vmem:[%s1669_s1 + $0xc0] sm:$0xff]  ;;  %v713_v29 = vld [vmem:[%s1669_s1 + $0xc8] sm:$0xff]  ;;  %v1095_v30 = vpack.c.bf16 %v27_v27, %v26_v26  ;;  %v28_v32 = vld [vmem:[%s1669_s1 + $0x50] sm:$0xff] }
   0x8   :  { %1087 = vmatpush3.bf16.msra.mxu0 %v1086_v12  ;;  %v1119_v31 = vpack.c.bf16 %v713_v29, %v712_v28  ;;  %v29_v33 = vld [vmem:[%s1669_s1 + $0x58] sm:$0xff]  ;;  %v714_v34 = vld [vmem:[%s1669_s1 + $0xd0] sm:$0xff]  ;;  %v30_v38 = vld [vmem:[%s1669_s1 + $0x60] sm:$0xff] }
   0x9   :  { %1111 = vmatpush3.bf16.msra.mxu1 %v1110_v13  ;;  %1088 = vmatprep.subr.bf16.mxu0 %v1243_v0  ;;  %v715_v35 = vld [vmem:[%s1669_s1 + $0xd8] sm:$0xff]  ;;  %v1098_v36 = vpack.c.bf16 %v29_v33, %v28_v32  ;;  %v31_v39 = vld [vmem:[%s1669_s1 + $0x68] sm:$0xff]  ;;  %v716_v40 = vld [vmem:[%s1669_s1 + $0xe0] sm:$0xff] }
   0xa   :  { %1112 = vmatprep.subr.bf16.mxu1 %v1243_v0  ;;  %v1122_v37 = vpack.c.bf16 %v715_v35, %v714_v34  ;;  %v717_v41 = vld [vmem:[%s1669_s1 + $0xe8] sm:$0xff]  ;;  %v1101_v42 = vpack.c.bf16 %v31_v39, %v30_v38  ;;  %v32_v44 = vld [vmem:[%s1669_s1 + $0x70] sm:$0xff]  ;;  %v33_v45 = vld [vmem:[%s1669_s1 + $0x78] sm:$0xff] }
   0xb   :  { %v1125_v43 = vpack.c.bf16 %v717_v41, %v716_v40  ;;  %v718_v46 = vld [vmem:[%s1669_s1 + $0xf0] sm:$0xff]  ;;  %v719_v47 = vld [vmem:[%s1669_s1 + $0xf8] sm:$0xff]  ;;  %v1104_v48 = vpack.c.bf16 %v33_v45, %v32_v44  ;;  %v17_v50 = vld [vmem:[%s1670_s0] sm:$0xff] }
   0xc   :  { %1090 = vmatpush3.bf16.msra.mxu0 %v1089_v18  ;;  %v1128_v49 = vpack.c.bf16 %v719_v47, %v718_v46  ;;  %v240_v51 = vld [vmem:[%s1671_s2] sm:$0xff]  ;;  %v241_v52 = vld [vmem:[%s1671_s2 + $0x8] sm:$0xff]  ;;  %v242_v54 = vld [vmem:[%s1671_s2 + $0x10] sm:$0xff] }
   0xd   :  { %1114 = vmatpush3.bf16.msra.mxu1 %v1113_v19  ;;  %1091 = vmatprep.subr.bf16.mxu0 %v1243_v0  ;;  %v1131_v53 = vpack.c.bf16 %v241_v52, %v240_v51  ;;  %v243_v55 = vld [vmem:[%s1671_s2 + $0x18] sm:$0xff]  ;;  %v244_v57 = vld [vmem:[%s1671_s2 + $0x20] sm:$0xff]  ;;  %v245_v58 = vld [vmem:[%s1671_s2 + $0x28] sm:$0xff] }
   0xe   :  { %1115 = vmatprep.subr.bf16.mxu1 %v1243_v0  ;;  %v1134_v56 = vpack.c.bf16 %v243_v55, %v242_v54  ;;  %v1137_v59 = vpack.c.bf16 %v245_v58, %v244_v57  ;;  %v246_v60 = vld [vmem:[%s1671_s2 + $0x30] sm:$0xff]  ;;  %v247_v61 = vld [vmem:[%s1671_s2 + $0x38] sm:$0xff]  ;;  %v248_v63 = vld [vmem:[%s1671_s2 + $0x40] sm:$0xff] }
   0xf   :  { %v1140_v62 = vpack.c.bf16 %v247_v61, %v246_v60  ;;  %v249_v1 = vld [vmem:[%s1671_s2 + $0x48] sm:$0xff]  ;;  %v250_v3 = vld [vmem:[%s1671_s2 + $0x50] sm:$0xff]  ;;  %v251_v4 = vld [vmem:[%s1671_s2 + $0x58] sm:$0xff] }
  0x10   :  { %1093 = vmatpush3.bf16.msra.mxu0 %v1092_v24  ;;  %v1143_v2 = vpack.c.bf16 %v249_v1, %v248_v63  ;;  %v1146_v5 = vpack.c.bf16 %v251_v4, %v250_v3  ;;  %v252_v6 = vld [vmem:[%s1671_s2 + $0x60] sm:$0xff]  ;;  %v253_v7 = vld [vmem:[%s1671_s2 + $0x68] sm:$0xff]  ;;  %v254_v10 = vld [vmem:[%s1671_s2 + $0x70] sm:$0xff] }
  0x11   :  { %1117 = vmatpush3.bf16.msra.mxu1 %v1116_v25  ;;  %1094 = vmatprep.subr.bf16.mxu0 %v1243_v0  ;;  %v1149_v9 = vpack.c.bf16 %v253_v7, %v252_v6  ;;  %v255_v11 = vld [vmem:[%s1671_s2 + $0x78] sm:$0xff]  ;;  %v720_v15 = vld [vmem:[%s1672_s3 + $0x8] ss:$0 sm:$0xff]  ;;  %v721_v19 = vld [vmem:[%s1672_s3 + $0x9] ss:$0 sm:$0xff] }
  0x12   :  { %1118 = vmatprep.subr.bf16.mxu1 %v1243_v0  ;;  %v1152_v12 = vpack.c.bf16 %v255_v11, %v254_v10  ;;  %v205_v44 = vld [vmem:[%s1672_s3] sm:$0x1]  ;;  %v724_v58 = vld [vmem:[%s1671_s2 + $0x90] sm:$0xff] }
  0x13   :  { %v722_v55 = vld [vmem:[%s1671_s2 + $0x80] sm:$0xff]  ;;  %v728_v1 = vld [vmem:[%s1671_s2 + $0xb0] sm:$0xff] }
  0x14   :  { %1096 = vmatpush3.bf16.msra.mxu0 %v1095_v30  ;;  %v726_v61 = vld [vmem:[%s1671_s2 + $0xa0] sm:$0xff]  ;;  %v732_v7 = vld [vmem:[%s1671_s2 + $0xd0] sm:$0xff] }
  0x15   :  { %1120 = vmatpush3.bf16.msra.mxu1 %v1119_v31  ;;  %1097 = vmatprep.subr.bf16.mxu0 %v1243_v0  ;;  %v730_v4 = vld [vmem:[%s1671_s2 + $0xc0] sm:$0xff] }
  0x16   :  { %1121 = vmatprep.subr.bf16.mxu1 %v1243_v0  ;;  %v734_v11 = vld [vmem:[%s1671_s2 + $0xe0] sm:$0xff] }
  0x18   :  { %1099 = vmatpush3.bf16.msra.mxu0 %v1098_v36 }
  0x19   :  { %1123 = vmatpush3.bf16.msra.mxu1 %v1122_v37  ;;  %1100 = vmatprep.subr.bf16.mxu0 %v1243_v0 }
  0x1a   :  { %1124 = vmatprep.subr.bf16.mxu1 %v1243_v0 }
  0x1c   :  { %1102 = vmatpush3.bf16.msra.mxu0 %v1101_v42  ;;  %v228_v42 = vlaneseq }
  0x1d   :  { %1126 = vmatpush3.bf16.msra.mxu1 %v1125_v43  ;;  %1103 = vmatprep.subr.bf16.mxu0 %v1243_v0 }
  0x1e   :  { %1127 = vmatprep.subr.bf16.mxu1 %v1243_v0  ;;  %v229_v43 = vshrl.u32 %v228_v42, 7 }
  0x20   :  { %1105 = vmatpush3.bf16.msra.mxu0 %v1104_v48  ;;  %v1461_v45 = vsub.s32 0, %v229_v43  ;;  %v206_v48 = vld [vmem:[%s1672_s3 + $0x1] sm:$0x1]  ;;  %v330_v43 = vld [vmem:[%s1672_s3 + $0x3] sm:$0x1] }
  0x21   :  { %1129 = vmatpush3.bf16.msra.mxu1 %v1128_v49  ;;  %1130 = vmatprep.subr.bf16.mxu0 %v1243_v0 }
  0x22   :  { %1154 = vmatprep.subr.bf16.mxu1 %v1243_v0 }
  0x23   :  { %905 = vmatmul.mubr.f32.vlgmr.msra.gmra.mrb[0].mxu0 %v17_v50 }
  0x24   :  { %940 = vmatmul.mubr.f32.vlgmr.msra.gmra.mrb[0].mxu1 %v17_v50  ;;  %974 = vmatprep.mubr.msk.f32.mxu0 %vm1244_vm0, %v1245_v8 }
  0x25   :  { %1009 = vmatprep.mubr.msk.f32.mxu1 %vm1244_vm0, %v1245_v8  ;;  %1132 = vmatpush3.bf16.msra.mxu0 %v1131_v53 }
  0x26   :  { %1133 = vmatprep.subr.bf16.mxu0 %v1243_v0 }
  0x29   :  { %1135 = vmatpush3.bf16.msra.mxu0 %v1134_v56  ;;  %v723_v56 = vld [vmem:[%s1671_s2 + $0x88] sm:$0xff] }
  0x2a   :  { %1136 = vmatprep.subr.bf16.mxu0 %v1243_v0  ;;  %v1155_v57 = vpack.c.bf16 %v723_v56, %v722_v55  ;;  %v741_v55 = vld [vmem:[%s1671_s2 + $0x118] sm:$0xff]  ;;  %v742_v56 = vld [vmem:[%s1671_s2 + $0x120] sm:$0xff] }
  0x2c   :  { %1156 = vmatpush3.bf16.msra.mxu1 %v1155_v57  ;;  %v743_v57 = vld [vmem:[%s1671_s2 + $0x128] sm:$0xff] }
  0x2d   :  { %1138 = vmatpush3.bf16.msra.mxu0 %v1137_v59  ;;  %v725_v59 = vld [vmem:[%s1671_s2 + $0x98] sm:$0xff]  ;;  %1157 = vmatprep.subr.bf16.mxu1 %v1243_v0 }
  0x2e   :  { %1139 = vmatprep.subr.bf16.mxu0 %v1243_v0  ;;  %v1158_v60 = vpack.c.bf16 %v725_v59, %v724_v58  ;;  %v1185_v58 = vpack.c.bf16 %v743_v57, %v742_v56  ;;  %v744_v59 = vld [vmem:[%s1671_s2 + $0x130] sm:$0xff]  ;;  %v762_v57 = vld [vmem:[%s1671_s2 + $0x1c0] sm:$0xff] }
  0x30   :  { %1159 = vmatpush3.bf16.msra.mxu1 %v1158_v60  ;;  %v745_v60 = vld [vmem:[%s1671_s2 + $0x138] sm:$0xff] }
  0x31   :  { %1141 = vmatpush3.bf16.msra.mxu0 %v1140_v62  ;;  %v727_v62 = vld [vmem:[%s1671_s2 + $0xa8] sm:$0xff]  ;;  %1160 = vmatprep.subr.bf16.mxu1 %v1243_v0 }
  0x32   :  { %1142 = vmatprep.subr.bf16.mxu0 %v1243_v0  ;;  %v1161_v63 = vpack.c.bf16 %v727_v62, %v726_v61  ;;  %v1188_v61 = vpack.c.bf16 %v745_v60, %v744_v59  ;;  %v746_v62 = vld [vmem:[%s1671_s2 + $0x140] sm:$0xff]  ;;  %v764_v60 = vld [vmem:[%s1671_s2 + $0x1d0] sm:$0xff] }
  0x34   :  { %1162 = vmatpush3.bf16.msra.mxu1 %v1161_v63  ;;  %v747_v63 = vld [vmem:[%s1671_s2 + $0x148] sm:$0xff] }
  0x35   :  { %1144 = vmatpush3.bf16.msra.mxu0 %v1143_v2  ;;  %v729_v2 = vld [vmem:[%s1671_s2 + $0xb8] sm:$0xff]  ;;  %1163 = vmatprep.subr.bf16.mxu1 %v1243_v0 }
  0x36   :  { %1145 = vmatprep.subr.bf16.mxu0 %v1243_v0  ;;  %v1164_v3 = vpack.c.bf16 %v729_v2, %v728_v1  ;;  %v1191_v1 = vpack.c.bf16 %v747_v63, %v746_v62  ;;  %v748_v2 = vld [vmem:[%s1671_s2 + $0x150] sm:$0xff]  ;;  %v766_v63 = vld [vmem:[%s1671_s2 + $0x1e0] sm:$0xff] }
  0x38   :  { %1165 = vmatpush3.bf16.msra.mxu1 %v1164_v3  ;;  %v749_v3 = vld [vmem:[%s1671_s2 + $0x158] sm:$0xff] }
  0x39   :  { %1147 = vmatpush3.bf16.msra.mxu0 %v1146_v5  ;;  %v731_v5 = vld [vmem:[%s1671_s2 + $0xc8] sm:$0xff]  ;;  %1166 = vmatprep.subr.bf16.mxu1 %v1243_v0 }
  0x3a   :  { %1148 = vmatprep.subr.bf16.mxu0 %v1243_v0  ;;  %v1167_v6 = vpack.c.bf16 %v731_v5, %v730_v4  ;;  %v1194_v4 = vpack.c.bf16 %v749_v3, %v748_v2  ;;  %v750_v5 = vld [vmem:[%s1671_s2 + $0x160] sm:$0xff]  ;;  %v768_v3 = vld [vmem:[%s1671_s2 + $0x1f0] sm:$0xff] }
  0x3c   :  { %1168 = vmatpush3.bf16.msra.mxu1 %v1167_v6  ;;  %v751_v6 = vld [vmem:[%s1671_s2 + $0x168] sm:$0xff] }
  0x3d   :  { %1150 = vmatpush3.bf16.msra.mxu0 %v1149_v9  ;;  %v733_v9 = vld [vmem:[%s1671_s2 + $0xd8] sm:$0xff]  ;;  %1169 = vmatprep.subr.bf16.mxu1 %v1243_v0 }
  0x3e   :  { %1151 = vmatprep.subr.bf16.mxu0 %v1243_v0  ;;  %v1170_v10 = vpack.c.bf16 %v733_v9, %v732_v7  ;;  %v1197_v7 = vpack.c.bf16 %v751_v6, %v750_v5  ;;  %v752_v9 = vld [vmem:[%s1671_s2 + $0x170] sm:$0xff] }
  0x40   :  { %1171 = vmatpush3.bf16.msra.mxu1 %v1170_v10  ;;  %v753_v10 = vld [vmem:[%s1671_s2 + $0x178] sm:$0xff] }
  0x41   :  { %1153 = vmatpush3.bf16.msra.mxu0 %v1152_v12  ;;  %v735_v12 = vld [vmem:[%s1671_s2 + $0xe8] sm:$0xff]  ;;  %1172 = vmatprep.subr.bf16.mxu1 %v1243_v0 }
  0x42   :  { %1178 = vmatprep.subr.bf16.mxu0 %v1243_v0 }
  0xf6   :  { %v100_v13 = vpop.f32.mrb[0].mxu0 }
  0xf7   :  { %v187_v14 = vpop.f32.mrb[0].mxu1  ;;  %v906_v16 = vpop.f32.mrb[1].mxu0 }
  0xf8   :  { %v191_v17 = vmax.f32 %v100_v13, %v187_v14  ;;  %v941_v18 = vpop.f32.mrb[1].mxu1  ;;  %v1173_v13 = vpack.c.bf16 %v735_v12, %v734_v11  ;;  %v736_v14 = vld [vmem:[%s1671_s2 + $0xf0] sm:$0xff]  ;;  %v1200_v11 = vpack.c.bf16 %v753_v10, %v752_v9 }
  0xfa   :  { %v197_v20 = vadd.f32 %v720_v15, %v191_v17  ;;  %v737_v15 = vld [vmem:[%s1671_s2 + $0xf8] sm:$0xff]  ;;  %1174 = vmatpush3.bf16.msra.mxu1 %v1173_v13 }
  0xfb   :  { %v1176_v16 = vpack.c.bf16 %v737_v15, %v736_v14  ;;  %1175 = vmatprep.subr.bf16.mxu1 %v1243_v0 }
  0xfc   :  { %v203_v21 = vmul.f32 %v721_v19, %v197_v20 }
  0xfe   :  { %v204_v22 = vmax.f32 %v197_v20, %v203_v21  ;;  %1177 = vmatpush3.bf16.msra.mxu1 %v1176_v16 }
  0xff   :  { %1202 = vmatprep.subr.bf16.mxu1 %v1243_v0 }
 0x100   :  { %v207_v23 = vrot.slane %v204_v22, 4  ;;  %v213_v24 = vmul.f32 %v204_v22, %v204_v22 }
 0x102   :  { %v208_v25 = vadd.f32 %v207_v23, %v204_v22  ;;  %v214_v26 = vrot.slane %v213_v24, 4 }
 0x104   :  { %v209_v27 = vrot.slane %v208_v25, 2  ;;  %v215_v28 = vadd.f32 %v214_v26, %v213_v24 }
 0x106   :  { %v210_v29 = vadd.f32 %v209_v27, %v208_v25  ;;  %v216_v30 = vrot.slane %v215_v28, 2 }
 0x108   :  { %v211_v31 = vrot.slane %v210_v29, 1  ;;  %v217_v32 = vadd.f32 %v216_v30, %v215_v28 }
 0x10a   :  { %v218_v33 = vrot.slane %v217_v32, 1  ;;  %v212_v34 = vadd.f32 %v211_v31, %v210_v29 }
 0x10c   :  { %v219_v35 = vadd.f32 %v218_v33, %v217_v32  ;;  %v220_v36 = vmul.f32 0.125, %v212_v34 }
 0x10e   :  { %v221_v37 = vmul.f32 0.125, %v219_v35  ;;  %v222_v38 = vmul.f32 %v220_v36, %v220_v36 }
 0x110   :  { %v223_v39 = vsub.f32 %v221_v37, %v222_v38 }
 0x112   :  { %v224_v40 = vmax.f32 %v223_v39, 0.0 }
 0x114   :  { %v225_v41 = vadd.f32 1e-05, %v224_v40  ;;  %v329_v40 = vld [vmem:[%s1672_s3 + $0x2] sm:$0x1] }
 0x116   :  { %1229 = vrsqrt.f32 %v225_v41 }
 0x120   :  { %v1230_v46 = vpop.eup %1229 }
 0x121   :  { %v227_v47 = vmul.f32 %v1230_v46, %v205_v44 }
 0x123   :  { %v231_v49 = vrot.slane %v227_v47, %v1461_v45  ;;  %v233_v50 = vmul.f32 %v227_v47, %v220_v36 }
 0x125   :  { %v234_v51 = vsub.f32 %v206_v48, %v233_v50  ;;  %v232_v52 = vmul.f32 %v231_v49, %v204_v22 }
 0x127   :  { %v238_v53 = vrot.slane %v234_v51, %v1461_v45  ;;  %v738_v51 = vld [vmem:[%s1671_s2 + $0x100] sm:$0xff] }
 0x129   :  { %v239_v54 = vadd.f32 %v238_v53, %v232_v52  ;;  %v739_v52 = vld [vmem:[%s1671_s2 + $0x108] sm:$0xff] }
 0x12a   :  { %v1179_v53 = vpack.c.bf16 %v739_v52, %v738_v51  ;;  %v758_v52 = vld [vmem:[%s1671_s2 + $0x1a0] sm:$0xff] }
 0x12b   :  { %975 = vmatmul.mubr.f32.vlgmr.msra.gmra.mrb[2].mxu0 %v239_v54  ;;  %v740_v54 = vld [vmem:[%s1671_s2 + $0x110] sm:$0xff] }
 0x12c   :  { %1044 = vmatprep.mubr.msk.f32.mxu0 %vm1244_vm0, %v1245_v8  ;;  %1180 = vmatpush3.bf16.msra.mxu0 %v1179_v53  ;;  %v759_v53 = vld [vmem:[%s1671_s2 + $0x1a8] sm:$0xff] }
 0x12d   :  { %1181 = vmatprep.subr.bf16.mxu0 %v1243_v0 }
 0x1fe   :  { %v322_v17 = vpop.f32.mrb[2].mxu0 }
 0x1ff   :  { %1231 = vtanh.f32 %v322_v17  ;;  %v976_v18 = vpop.f32.mrb[3].mxu0 }
 0x209   :  { %v1232_v19 = vpop.eup %1231 }
 0x20a   :  { %v328_v20 = vsel %vm327_vm1, %v1232_v19, 0.0 }
 0x20b   :  { %v331_v21 = vrot.slane %v328_v20, 4  ;;  %v337_v22 = vmul.f32 %v328_v20, %v328_v20 }
 0x20d   :  { %v332_v23 = vadd.f32 %v331_v21, %v328_v20  ;;  %v338_v24 = vrot.slane %v337_v22, 4 }
 0x20f   :  { %v333_v25 = vrot.slane %v332_v23, 2  ;;  %v339_v26 = vadd.f32 %v338_v24, %v337_v22 }
 0x211   :  { %v334_v27 = vadd.f32 %v333_v25, %v332_v23  ;;  %v340_v28 = vrot.slane %v339_v26, 2 }
 0x213   :  { %v341_v29 = vadd.f32 %v340_v28, %v339_v26  ;;  %v335_v30 = vrot.slane %v334_v27, 1 }
 0x215   :  { %v342_v31 = vrot.slane %v341_v29, 1  ;;  %v336_v32 = vadd.f32 %v335_v30, %v334_v27 }
 0x217   :  { %v343_v33 = vadd.f32 %v342_v31, %v341_v29  ;;  %v344_v34 = vmul.f32 0.125, %v336_v32 }
 0x219   :  { %v345_v35 = vmul.f32 0.125, %v343_v33  ;;  %v346_v36 = vmul.f32 %v344_v34, %v344_v34 }
 0x21b   :  { %v347_v37 = vsub.f32 %v345_v35, %v346_v36  ;;  %v453_v35 = vld [vmem:[%s1672_s3 + $0x4] sm:$0x1] }
 0x21d   :  { %v348_v38 = vmax.f32 %v347_v37, 0.0 }
 0x21f   :  { %v349_v39 = vadd.f32 1e-05, %v348_v38  ;;  %v454_v38 = vld [vmem:[%s1672_s3 + $0x5] sm:$0x1] }
 0x221   :  { %1233 = vrsqrt.f32 %v349_v39 }
 0x22b   :  { %v1234_v41 = vpop.eup %1233 }
 0x22c   :  { %v351_v42 = vmul.f32 %v1234_v41, %v329_v40 }
 0x22e   :  { %v355_v44 = vrot.slane %v351_v42, %v1461_v45  ;;  %v357_v46 = vmul.f32 %v351_v42, %v344_v34 }
 0x230   :  { %v358_v47 = vsub.f32 %v330_v43, %v357_v46  ;;  %v356_v48 = vmul.f32 %v355_v44, %v328_v20  ;;  %v754_v46 = vld [vmem:[%s1671_s2 + $0x180] sm:$0xff] }
 0x232   :  { %v362_v49 = vrot.slane %v358_v47, %v1461_v45  ;;  %v755_v47 = vld [vmem:[%s1671_s2 + $0x188] sm:$0xff] }
 0x234   :  { %v363_v50 = vadd.f32 %v362_v49, %v356_v48  ;;  %v1203_v48 = vpack.c.bf16 %v755_v47, %v754_v46  ;;  %v756_v49 = vld [vmem:[%s1671_s2 + $0x190] sm:$0xff] }
 0x236   :  { %1010 = vmatmul.mubr.f32.vlgmr.msra.gmra.mrb[2].mxu1 %v363_v50  ;;  %v757_v50 = vld [vmem:[%s1671_s2 + $0x198] sm:$0xff] }
 0x237   :  { %1079 = vmatprep.mubr.msk.f32.mxu1 %vm1244_vm0, %v1245_v8  ;;  %v1182_v8 = vpack.c.bf16 %v741_v55, %v740_v54  ;;  %1204 = vmatpush3.bf16.msra.mxu1 %v1203_v48  ;;  %v1206_v51 = vpack.c.bf16 %v757_v50, %v756_v49  ;;  %v1209_v54 = vpack.c.bf16 %v759_v53, %v758_v52  ;;  %v760_v55 = vld [vmem:[%s1671_s2 + $0x1b0] sm:$0xff] }
 0x238   :  { %1205 = vmatprep.subr.bf16.mxu1 %v1243_v0 }
 0x239   :  { %1183 = vmatpush3.bf16.msra.mxu0 %v1182_v8  ;;  %v761_v8 = vld [vmem:[%s1671_s2 + $0x1b8] sm:$0xff] }
 0x23a   :  { %1184 = vmatprep.subr.bf16.mxu0 %v1243_v0  ;;  %v1212_v56 = vpack.c.bf16 %v761_v8, %v760_v55 }
 0x23b   :  { %1207 = vmatpush3.bf16.msra.mxu1 %v1206_v51 }
 0x23c   :  { %1208 = vmatprep.subr.bf16.mxu1 %v1243_v0 }
 0x23d   :  { %1186 = vmatpush3.bf16.msra.mxu0 %v1185_v58  ;;  %v763_v58 = vld [vmem:[%s1671_s2 + $0x1c8] sm:$0xff] }
 0x23e   :  { %1187 = vmatprep.subr.bf16.mxu0 %v1243_v0  ;;  %v1215_v59 = vpack.c.bf16 %v763_v58, %v762_v57 }
 0x23f   :  { %1210 = vmatpush3.bf16.msra.mxu1 %v1209_v54 }
 0x240   :  { %1211 = vmatprep.subr.bf16.mxu1 %v1243_v0 }
 0x241   :  { %1189 = vmatpush3.bf16.msra.mxu0 %v1188_v61  ;;  %v765_v61 = vld [vmem:[%s1671_s2 + $0x1d8] sm:$0xff] }
 0x242   :  { %1190 = vmatprep.subr.bf16.mxu0 %v1243_v0  ;;  %v1218_v62 = vpack.c.bf16 %v765_v61, %v764_v60 }
 0x243   :  { %1213 = vmatpush3.bf16.msra.mxu1 %v1212_v56 }
 0x244   :  { %1214 = vmatprep.subr.bf16.mxu1 %v1243_v0 }
 0x245   :  { %1192 = vmatpush3.bf16.msra.mxu0 %v1191_v1  ;;  %v767_v1 = vld [vmem:[%s1671_s2 + $0x1e8] sm:$0xff] }
 0x246   :  { %1193 = vmatprep.subr.bf16.mxu0 %v1243_v0  ;;  %v1221_v2 = vpack.c.bf16 %v767_v1, %v766_v63 }
 0x247   :  { %1216 = vmatpush3.bf16.msra.mxu1 %v1215_v59 }
 0x248   :  { %1217 = vmatprep.subr.bf16.mxu1 %v1243_v0 }
 0x249   :  { %1195 = vmatpush3.bf16.msra.mxu0 %v1194_v4  ;;  %v769_v4 = vld [vmem:[%s1671_s2 + $0x1f8] sm:$0xff] }
 0x24a   :  { %1196 = vmatprep.subr.bf16.mxu0 %v1243_v0  ;;  %v1224_v5 = vpack.c.bf16 %v769_v4, %v768_v3 }
 0x24b   :  { %1219 = vmatpush3.bf16.msra.mxu1 %v1218_v62 }
 0x24c   :  { %1220 = vmatprep.subr.bf16.mxu1 %v1243_v0 }
 0x24d   :  { %1198 = vmatpush3.bf16.msra.mxu0 %v1197_v7 }
 0x24e   :  { %1199 = vmatprep.subr.bf16.mxu0 %v1243_v0 }
 0x24f   :  { %1222 = vmatpush3.bf16.msra.mxu1 %v1221_v2 }
 0x250   :  { %1223 = vmatprep.subr.bf16.mxu1 %v1243_v0 }
 0x251   :  { %1201 = vmatpush3.bf16.msra.mxu0 %v1200_v11 }
 0x253   :  { %1225 = vmatpush3.bf16.msra.mxu1 %v1224_v5 }
 0x309   :  { %v447_v12 = vpop.f32.mrb[2].mxu1 }
 0x30a   :  { %1235 = vtanh.f32 %v447_v12  ;;  %v1011_v13 = vpop.f32.mrb[3].mxu1 }
 0x314   :  { %v1236_v14 = vpop.eup %1235 }
 0x315   :  { %v452_v15 = vsel %vm327_vm1, %v1236_v14, 0.0 }
 0x316   :  { %v455_v16 = vrot.slane %v452_v15, 4  ;;  %v461_v17 = vmul.f32 %v452_v15, %v452_v15 }
 0x318   :  { %v456_v18 = vadd.f32 %v455_v16, %v452_v15  ;;  %v462_v19 = vrot.slane %v461_v17, 4 }
 0x31a   :  { %v457_v20 = vrot.slane %v456_v18, 2  ;;  %v463_v21 = vadd.f32 %v462_v19, %v461_v17 }
 0x31c   :  { %v458_v22 = vadd.f32 %v457_v20, %v456_v18  ;;  %v464_v23 = vrot.slane %v463_v21, 2 }
 0x31e   :  { %v465_v24 = vadd.f32 %v464_v23, %v463_v21  ;;  %v459_v25 = vrot.slane %v458_v22, 1 }
 0x320   :  { %v466_v26 = vrot.slane %v465_v24, 1  ;;  %v460_v27 = vadd.f32 %v459_v25, %v458_v22 }
 0x322   :  { %v467_v28 = vadd.f32 %v466_v26, %v465_v24  ;;  %v468_v29 = vmul.f32 0.125, %v460_v27 }
 0x324   :  { %v469_v30 = vmul.f32 0.125, %v467_v28  ;;  %v470_v31 = vmul.f32 %v468_v29, %v468_v29 }
 0x326   :  { %v471_v32 = vsub.f32 %v469_v30, %v470_v31 }
 0x328   :  { %v472_v33 = vmax.f32 %v471_v32, 0.0  ;;  %v578_v32 = vld [vmem:[%s1672_s3 + $0x7] sm:$0x1] }
 0x32a   :  { %v473_v34 = vadd.f32 1e-05, %v472_v33 }
 0x32c   :  { %1237 = vrsqrt.f32 %v473_v34 }
 0x336   :  { %v1238_v36 = vpop.eup %1237 }
 0x337   :  { %v475_v37 = vmul.f32 %v1238_v36, %v453_v35 }
 0x339   :  { %v479_v39 = vrot.slane %v475_v37, %v1461_v45  ;;  %v481_v40 = vmul.f32 %v475_v37, %v468_v29  ;;  %v577_v29 = vld [vmem:[%s1672_s3 + $0x6] sm:$0x1] }
 0x33b   :  { %v482_v41 = vsub.f32 %v454_v38, %v481_v40  ;;  %v480_v42 = vmul.f32 %v479_v39, %v452_v15 }
 0x33d   :  { %v486_v43 = vrot.slane %v482_v41, %v1461_v45 }
 0x33f   :  { %v487_v44 = vadd.f32 %v486_v43, %v480_v42 }
 0x341   :  { %1045 = vmatmul.mubr.f32.vlgmr.msra.gmra.mrb[4].mxu0 %v487_v44 }
 0x414   :  { %v571_v6 = vpop.f32.mrb[4].mxu0 }
 0x415   :  { %1239 = vtanh.f32 %v571_v6  ;;  %v1046_v7 = vpop.f32.mrb[5].mxu0 }
 0x41f   :  { %v1240_v9 = vpop.eup %1239 }
 0x420   :  { %v576_v10 = vsel %vm327_vm1, %v1240_v9, 0.0 }
 0x421   :  { %v579_v11 = vrot.slane %v576_v10, 4  ;;  %v585_v12 = vmul.f32 %v576_v10, %v576_v10 }
 0x423   :  { %v580_v13 = vadd.f32 %v579_v11, %v576_v10  ;;  %v586_v14 = vrot.slane %v585_v12, 4 }
 0x425   :  { %v581_v15 = vrot.slane %v580_v13, 2  ;;  %v587_v16 = vadd.f32 %v586_v14, %v585_v12 }
 0x427   :  { %v582_v17 = vadd.f32 %v581_v15, %v580_v13  ;;  %v588_v18 = vrot.slane %v587_v16, 2 }
 0x429   :  { %v589_v19 = vadd.f32 %v588_v18, %v587_v16  ;;  %v583_v20 = vrot.slane %v582_v17, 1 }
 0x42b   :  { %v590_v21 = vrot.slane %v589_v19, 1  ;;  %v584_v22 = vadd.f32 %v583_v20, %v582_v17 }
 0x42d   :  { %v591_v0 = vadd.f32 %v590_v21, %v589_v19  ;;  %v592_v23 = vmul.f32 0.125, %v584_v22 }
 0x42f   :  { %v593_v24 = vmul.f32 0.125, %v591_v0  ;;  %v594_v25 = vmul.f32 %v592_v23, %v592_v23 }
 0x431   :  { %v595_v26 = vsub.f32 %v593_v24, %v594_v25 }
 0x433   :  { %v596_v27 = vmax.f32 %v595_v26, 0.0 }
 0x435   :  { %v597_v28 = vadd.f32 1e-05, %v596_v27 }
 0x437   :  { %1241 = vrsqrt.f32 %v597_v28 }
 0x441   :  { %v1242_v30 = vpop.eup %1241 }
 0x442   :  { %v599_v31 = vmul.f32 %v1242_v30, %v577_v29 }
 0x444   :  { %v603_v33 = vrot.slane %v599_v31, %v1461_v45  ;;  %v605_v34 = vmul.f32 %v599_v31, %v592_v23 }
 0x446   :  { %v606_v35 = vsub.f32 %v578_v32, %v605_v34  ;;  %v604_v36 = vmul.f32 %v603_v33, %v576_v10 }
 0x448   :  { %v610_v37 = vrot.slane %v606_v35, %v1461_v45 }
 0x44a   :  { %v611_v38 = vadd.f32 %v610_v37, %v604_v36 }
 0x44c   :  { %1080 = vmatmul.mubr.f32.vlgmr.msra.gmra.mrb[4].mxu1 %v611_v38 }
 0x51f   :  { %v695_v39 = vpop.f32.mrb[4].mxu1 }
 0x520   :  { %699 = vst.msk [vmem:[%s1673_s4] sm:$0xff] %vm327_vm1, %v695_v39  ;;  %v1081_v40 = vpop.f32.mrb[5].mxu1 }

</bundles_post_ra>
